<compile_context>
chip_gen: v7x
topology: tpu7x:2x2x1
jax: 0.10.0
libtpu: 0.0.40
codegen_flags: <defaults>
</compile_context>

<pallas_src>
import functools
import math

import jax
import jax.numpy as jnp
from jax import lax
from jax.experimental import pallas as pl
from jax.experimental.pallas import tpu as pltpu


# ----------------------------------------------------------------------------
# Small helpers
# ----------------------------------------------------------------------------
def _probe_single_buffering():
    """pl.Buffered(1) on constant-index operands halves resident-weight VMEM.
    Probe once; fall back to default double-buffering if unsupported."""
    try:
        mode = pl.Buffered(buffer_count=1)
        spec = pl.BlockSpec((8, 128), lambda i: (0, 0), pipeline_mode=mode)

        def _k(x_ref, o_ref):
            o_ref[...] = x_ref[...] + 1.0

        pl.pallas_call(
            _k,
            out_shape=jax.ShapeDtypeStruct((8, 128), jnp.float32),
            grid=(1,),
            in_specs=[spec],
            out_specs=pl.BlockSpec((8, 128), lambda i: (0, 0)),
        )(jnp.zeros((8, 128), jnp.float32))
        return mode
    except Exception:
        return None


_CONST_PIPELINE_MODE = _probe_single_buffering()
_N_CONST_BUFS = 1 if _CONST_PIPELINE_MODE is not None else 2


def _const_spec(shape, index_map):
    """BlockSpec for an operand whose block never changes across the grid."""
    if _CONST_PIPELINE_MODE is None:
        return pl.BlockSpec(shape, index_map)
    return pl.BlockSpec(shape, index_map, pipeline_mode=_CONST_PIPELINE_MODE)


def _vmem_params(dim_semantics, blocks):
    """CompilerParams with vmem_limit_bytes derived from block footprints.

    blocks: iterable of (shape, dtype, n_buffers)."""
    total = 0
    for shape, dtype, nbuf in blocks:
        n = 1
        for d in shape:
            n *= int(d)
        total += n * jnp.dtype(dtype).itemsize * int(nbuf)
    limit = int(total * 1.5) + (4 << 20)      # headroom for sems / relayouts
    limit = max(limit, 32 << 20)              # never below the v6e/v7x default
    limit = min(limit, 96 << 20)              # usage > 64 MiB still fails on v7x
    return pltpu.CompilerParams(
        dimension_semantics=dim_semantics, vmem_limit_bytes=limit
    )


def _pick_divisor_tile(n, max_tile):
    """Largest divisor of n that is <= max_tile (prefer multiples of 128)."""
    if n <= max_tile:
        return n
    start = max_tile - (max_tile % 128)
    for t in range(start, 0, -128):
        if n % t == 0:
            return t
    for t in range(max_tile, 0, -1):
        if n % t == 0:
            return t
    return n


def _layernorm(y, g, b, eps):
    # torch reference semantics: std with Bessel's correction; denom (std+eps).
    d = y.shape[-1]
    mean = jnp.mean(y, axis=-1, keepdims=True)
    diff = y - mean
    var = jnp.sum(diff * diff, axis=-1, keepdims=True) / (d - 1)
    return g * (diff / (jnp.sqrt(var) + eps)) + b


# ----------------------------------------------------------------------------
# Pallas kernels
# ----------------------------------------------------------------------------
def _qkv_proj_kernel(x_ref, wq_ref, bq_ref, wkv_ref, bkv_ref, q_ref, kv_ref):
    # One row tile: fused Q and (K|V) projections read x once; bf16 MXU, f32 acc.
    x = x_ref[...].astype(jnp.bfloat16)
    q = jnp.dot(x, wq_ref[...], preferred_element_type=jnp.float32) + bq_ref[...]
    kv = jnp.dot(x, wkv_ref[...], preferred_element_type=jnp.float32) + bkv_ref[...]
    q_ref[...] = q.astype(q_ref.dtype)
    kv_ref[...] = kv.astype(kv_ref.dtype)


def _mha_kernel(q_ref, kv_ref, m_ref, ctx_ref, att_ref, *, n_heads, d_k, d_v, scale):
    # One (batch, q-block) step.  q:(1,TQ,H*dk), kv:(1,S,H*(dk+dv)) bf16,
    # mask:(1,TQ,S) int8.  Heads are sliced out of the lane dim in VMEM, so no
    # HBM-level (B,S,H,d)<->(B,H,S,d) transposes exist anywhere.
    q_all = q_ref[0]                              # (TQ, H*dk)   bf16
    kv = kv_ref[0]                                # (S, H*(dk+dv)) bf16
    masked = m_ref[0] != 0                        # (TQ, S) bool — hoisted once
    inv_scale = jnp.float32(1.0 / scale)
    n_k = n_heads * d_k

    ctx_parts = []
    # TODO(synk): for large n_heads move this loop onto a grid axis (needs a
    # head-major q/k/v layout so lane slices stay 128-aligned).
    for h in range(n_heads):
        qh = q_all[:, h * d_k:(h + 1) * d_k]
        kh = kv[:, h * d_k:(h + 1) * d_k]
        vh = kv[:, n_k + h * d_v:n_k + (h + 1) * d_v]

        # q @ k^T, bf16 operands, f32 accumulation; 1/sqrt(dk) applied in f32.
        scores = lax.dot_general(
            qh, kh, (((1,), (1,)), ((), ())), preferred_element_type=jnp.float32
        ) * inv_scale
        scores = jnp.where(masked, jnp.float32(-1e9), scores)

        scores = scores - jnp.max(scores, axis=-1, keepdims=True)
        e = jnp.exp(scores)                                       # f32 stats
        denom = jnp.sum(e, axis=-1, keepdims=True)
        att = e * pl.reciprocal(denom, approx=True)               # EUP vrcp

        att_ref[0, h] = att.astype(att_ref.dtype)                 # lane-dense (TQ,S)
        ctx_parts.append(
            jnp.dot(att.astype(kv.dtype), vh, preferred_element_type=jnp.float32)
        )

    # Single lane-dense (TQ, H*dv) store instead of per-head narrow stores.
    ctx_ref[0] = jnp.concatenate(ctx_parts, axis=-1).astype(ctx_ref.dtype)


def _out_proj_add_ln_kernel(ctx_ref, w_ref, b_ref, res_ref, g_ref, bln_ref, o_ref, *, eps):
    # w_o projection fused with (dropout=identity) + residual add + LayerNorm.
    y = (
        jnp.dot(ctx_ref[...], w_ref[...], preferred_element_type=jnp.float32)
        + b_ref[...]
        + res_ref[...]                           # residual stays f32
    )
    o_ref[...] = _layernorm(y, g_ref[...], bln_ref[...], eps)


def _ffn_add_ln_kernel(x_ref, w1_ref, b1_ref, w2_ref, b2_ref, g_ref, bln_ref,
                       o_ref, acc_ref, *, eps):
    # fc1 -> relu -> fc2 with the hidden dim tiled along grid axis 1 ('arbitrary');
    # fc2 partials accumulate into a f32 VMEM scratch, epilogue adds residual + LN.
    f = pl.program_id(1)

    @pl.when(f == 0)
    def _():
        acc_ref[...] = jnp.zeros_like(acc_ref)

    x = x_ref[...]                                               # (TM, D) f32
    h = jnp.dot(x.astype(jnp.bfloat16), w1_ref[...],
                preferred_element_type=jnp.float32) + b1_ref[...]
    h = jnp.maximum(h, 0.0)
    acc_ref[...] += jnp.dot(h.astype(jnp.bfloat16), w2_ref[...],
                            preferred_element_type=jnp.float32)

    @pl.when(f == pl.num_programs(1) - 1)
    def _():
        y = acc_ref[...] + b2_ref[...] + x                       # residual add
        o_ref[...] = _layernorm(y, g_ref[...], bln_ref[...], eps)


# ----------------------------------------------------------------------------
# pallas_call wrappers
# ----------------------------------------------------------------------------
def qkv_projection(x2d, w_q, b_q, w_kv, b_kv, *, max_row_tile=512):
    M, D = x2d.shape
    nq, nkv = w_q.shape[1], w_kv.shape[1]
    tm = min(M, max_row_tile)
    params = _vmem_params(("parallel",), [
        ((tm, D), x2d.dtype, 2),
        ((D, nq), jnp.bfloat16, _N_CONST_BUFS), ((1, nq), jnp.float32, _N_CONST_BUFS),
        ((D, nkv), jnp.bfloat16, _N_CONST_BUFS), ((1, nkv), jnp.float32, _N_CONST_BUFS),
        ((tm, nq), jnp.bfloat16, 2), ((tm, nkv), jnp.bfloat16, 2),
    ])
    return pl.pallas_call(
        _qkv_proj_kernel,
        out_shape=(jax.ShapeDtypeStruct((M, nq), jnp.bfloat16),
                   jax.ShapeDtypeStruct((M, nkv), jnp.bfloat16)),
        grid=(pl.cdiv(M, tm),),
        in_specs=[
            pl.BlockSpec((tm, D), lambda i: (i, 0)),
            _const_spec((D, nq), lambda i: (0, 0)),
            _const_spec((1, nq), lambda i: (0, 0)),
            _const_spec((D, nkv), lambda i: (0, 0)),
            _const_spec((1, nkv), lambda i: (0, 0)),
        ],
        out_specs=(pl.BlockSpec((tm, nq), lambda i: (i, 0)),
                   pl.BlockSpec((tm, nkv), lambda i: (i, 0))),
        compiler_params=params,
    )(x2d, w_q, b_q.reshape(1, nq), w_kv, b_kv.reshape(1, nkv))


def multi_head_attention(q3d, kv3d, mask_i8, n_heads, d_k, d_v, *,
                         max_q_tile=128, atten_dtype=jnp.float32):
    B, S, _ = q3d.shape
    n_kv = kv3d.shape[-1]
    tq = min(S, max_q_tile)
    params = _vmem_params(("parallel", "parallel"), [
        ((1, tq, n_heads * d_k), jnp.bfloat16, 2),
        ((1, S, n_kv), jnp.bfloat16, 2),
        ((1, tq, S), jnp.int8, 2),
        ((1, tq, n_heads * d_v), jnp.bfloat16, 2),
        ((1, n_heads, tq, S), atten_dtype, 2),
        ((tq, S), jnp.float32, 4),          # in-kernel score/exp slack
    ])
    return pl.pallas_call(
        functools.partial(_mha_kernel, n_heads=n_heads, d_k=d_k, d_v=d_v,
                          scale=math.sqrt(d_k)),
        out_shape=(jax.ShapeDtypeStruct((B, S, n_heads * d_v), jnp.bfloat16),
                   jax.ShapeDtypeStruct((B, n_heads, S, S), atten_dtype)),
        grid=(B, pl.cdiv(S, tq)),
        in_specs=[
            pl.BlockSpec((1, tq, n_heads * d_k), lambda b, i: (b, i, 0)),
            pl.BlockSpec((1, S, n_kv), lambda b, i: (b, 0, 0)),   # K/V resident per batch
            pl.BlockSpec((1, tq, S), lambda b, i: (b, i, 0)),     # int8 mask
        ],
        out_specs=(
            pl.BlockSpec((1, tq, n_heads * d_v), lambda b, i: (b, i, 0)),
            pl.BlockSpec((1, n_heads, tq, S), lambda b, i: (b, 0, i, 0)),
        ),
        compiler_params=params,
    )(q3d, kv3d, mask_i8)


def out_proj_add_layernorm(ctx2d, w_o, b_o, res2d, gamma, beta, eps=1e-6, *,
                           max_row_tile=512):
    M, K = ctx2d.shape
    D = w_o.shape[1]
    tm = min(M, max_row_tile)
    params = _vmem_params(("parallel",), [
        ((tm, K), jnp.bfloat16, 2),
        ((K, D), jnp.bfloat16, _N_CONST_BUFS),
        ((1, D), jnp.float32, 3 * _N_CONST_BUFS),
        ((tm, D), jnp.float32, 2),   # residual
        ((tm, D), jnp.float32, 2),   # output
    ])
    return pl.pallas_call(
        functools.partial(_out_proj_add_ln_kernel, eps=eps),
        out_shape=jax.ShapeDtypeStruct((M, D), jnp.float32),
        grid=(pl.cdiv(M, tm),),
        in_specs=[
            pl.BlockSpec((tm, K), lambda i: (i, 0)),
            _const_spec((K, D), lambda i: (0, 0)),
            _const_spec((1, D), lambda i: (0, 0)),
            pl.BlockSpec((tm, D), lambda i: (i, 0)),
            _const_spec((1, D), lambda i: (0, 0)),
            _const_spec((1, D), lambda i: (0, 0)),
        ],
        out_specs=pl.BlockSpec((tm, D), lambda i: (i, 0)),
        compiler_params=params,
    )(ctx2d, w_o, b_o.reshape(1, D), res2d, gamma.reshape(1, D), beta.reshape(1, D))


def ffn_add_layernorm(x2d, w1, b1, w2, b2, gamma, beta, eps=1e-6, *,
                      max_row_tile=512, max_f_tile=512):
    M, D = x2d.shape
    F = w1.shape[1]
    tm = min(M, max_row_tile)
    tf = _pick_divisor_tile(F, max_f_tile)        # exact divisor: no padded F-tiles
    params = _vmem_params(("parallel", "arbitrary"), [
        ((tm, D), jnp.float32, 2),
        ((D, tf), jnp.bfloat16, 2), ((1, tf), jnp.float32, 2),
        ((tf, D), jnp.bfloat16, 2),
        ((1, D), jnp.float32, 3 * _N_CONST_BUFS),
        ((tm, D), jnp.float32, 2),                # output
        ((tm, D), jnp.float32, 1),                # acc scratch
        ((tm, tf), jnp.float32, 2),               # hidden intermediate slack
    ])
    return pl.pallas_call(
        functools.partial(_ffn_add_ln_kernel, eps=eps),
        out_shape=jax.ShapeDtypeStruct((M, D), jnp.float32),
        grid=(pl.cdiv(M, tm), F // tf),
        in_specs=[
            pl.BlockSpec((tm, D), lambda i, f: (i, 0)),
            pl.BlockSpec((D, tf), lambda i, f: (0, f)),
            pl.BlockSpec((1, tf), lambda i, f: (0, f)),
            pl.BlockSpec((tf, D), lambda i, f: (f, 0)),
            _const_spec((1, D), lambda i, f: (0, 0)),
            _const_spec((1, D), lambda i, f: (0, 0)),
            _const_spec((1, D), lambda i, f: (0, 0)),
        ],
        out_specs=pl.BlockSpec((tm, D), lambda i, f: (i, 0)),
        scratch_shapes=[pltpu.VMEM((tm, D), jnp.float32)],
        compiler_params=params,
    )(x2d, w1, b1.reshape(1, F), w2, b2.reshape(1, D),
      gamma.reshape(1, D), beta.reshape(1, D))


# ----------------------------------------------------------------------------
# EncoderBlock forward (glue in plain JAX, hot paths in Pallas)
# ----------------------------------------------------------------------------
def encoder_block_forward(params, x, atten_mask):
    """x: (B, S, d_model) f32; atten_mask: (B, S, S) bool (True == masked)."""
    B, S, D = x.shape
    H, dk, dv = params["n_heads"], params["d_k"], params["d_v"]

    x2d = x.reshape(B * S, D)
    mask_i8 = atten_mask.astype(jnp.int8)          # 4x less HBM than f32 mask

    # --- fused Q / (K|V) projections (single x read per tile) ----------------
    q2d, kv2d = qkv_projection(x2d, params["w_q"], params["b_q"],
                               params["w_kv"], params["b_kv"])
    q3d = q2d.reshape(B, S, H * dk)                # free reshapes, no transposes
    kv3d = kv2d.reshape(B, S, H * (dk + dv))

    # --- multi-head attention -------------------------------------------------
    context, atten = multi_head_attention(q3d, kv3d, mask_i8, H, dk, dv)
    context2d = context.reshape(B * S, H * dv)

    # --- output projection + dropout(identity) + residual + LayerNorm ---------
    attn_out = out_proj_add_layernorm(
        context2d, params["w_o"], params["b_o"], x2d, params["ln1_g"], params["ln1_b"]
    )

    # --- position-wise FFN + dropout(identity) + residual + LayerNorm ---------
    out2d = ffn_add_layernorm(
        attn_out, params["w_ff1"], params["b_ff1"], params["w_ff2"], params["b_ff2"],
        params["ln2_g"], params["ln2_b"]
    )

    return out2d.reshape(B, S, D), atten


# ----------------------------------------------------------------------------
# Parameter init (mirrors the module's __init__; weights stored in bf16)
# ----------------------------------------------------------------------------
def _xavier_normal(key, fan_in, fan_out):
    std = math.sqrt(2.0 / (fan_in + fan_out))
    # stored as (in, out): x @ W matches torch's x @ W.T
    return std * jax.random.normal(key, (fan_in, fan_out), dtype=jnp.float32)


def init_params(key, d_model, d_k, d_v, d_ff, n_heads):
    ks = jax.random.split(key, 6)
    bf16 = lambda a: a.astype(jnp.bfloat16)
    w_q = _xavier_normal(ks[0], d_model, d_k * n_heads)
    w_k = _xavier_normal(ks[1], d_model, d_k * n_heads)
    w_v = _xavier_normal(ks[2], d_model, d_v * n_heads)
    return {
        "n_heads": n_heads, "d_k": d_k, "d_v": d_v,
        "w_q": bf16(w_q),
        "b_q": jnp.zeros((d_k * n_heads,), jnp.float32),
        # K and V fused so attention reads one contiguous (S, H*(dk+dv)) slab.
        "w_kv": bf16(jnp.concatenate([w_k, w_v], axis=1)),
        "b_kv": jnp.zeros(((d_k + d_v) * n_heads,), jnp.float32),
        "w_o": bf16(_xavier_normal(ks[3], n_heads * d_v, d_model)),
        "b_o": jnp.zeros((d_model,), jnp.float32),
        "ln1_g": jnp.ones((d_model,), jnp.float32),
        "ln1_b": jnp.zeros((d_model,), jnp.float32),
        "w_ff1": bf16(_xavier_normal(ks[4], d_model, d_ff)),
        "b_ff1": jnp.zeros((d_ff,), jnp.float32),
        "w_ff2": bf16(_xavier_normal(ks[5], d_ff, d_model)),
        "b_ff2": jnp.zeros((d_model,), jnp.float32),
        "ln2_g": jnp.ones((d_model,), jnp.float32),
        "ln2_b": jnp.zeros((d_model,), jnp.float32),
    }


# ----------------------------------------------------------------------------
# Pure-JAX reference (f32 math on bf16 weights) for a sanity check
# ----------------------------------------------------------------------------
def _reference_forward(params, x, atten_mask):
    B, S, D = x.shape
    H, dk, dv = params["n_heads"], params["d_k"], params["d_v"]
    f32 = lambda a: a.astype(jnp.float32)

    def ln(y, g, b, eps=1e-6):
        mean = y.mean(-1, keepdims=True)
        var = jnp.sum((y - mean) ** 2, -1, keepdims=True) / (y.shape[-1] - 1)
        return g * (y - mean) / (jnp.sqrt(var) + eps) + b

    q = x @ f32(params["w_q"]) + params["b_q"]
    kv = x @ f32(params["w_kv"]) + params["b_kv"]
    k, v = kv[..., :H * dk], kv[..., H * dk:]
    qh = q.reshape(B, S, H, dk).transpose(0, 2, 1, 3)
    kh = k.reshape(B, S, H, dk).transpose(0, 2, 1, 3)
    vh = v.reshape(B, S, H, dv).transpose(0, 2, 1, 3)
    scores = jnp.einsum("bhqd,bhkd->bhqk", qh, kh) / math.sqrt(dk)
    scores = jnp.where(atten_mask[:, None, :, :], -1e9, scores)
    atten = jax.nn.softmax(scores, axis=-1)
    ctx = jnp.einsum("bhqk,bhkd->bhqd", atten, vh)
    ctx = ctx.transpose(0, 2, 1, 3).reshape(B, S, H * dv)
    attn_out = ln(ctx @ f32(params["w_o"]) + params["b_o"] + x,
                  params["ln1_g"], params["ln1_b"])
    h1 = jnp.maximum(attn_out @ f32(params["w_ff1"]) + params["b_ff1"], 0.0)
    out = ln(h1 @ f32(params["w_ff2"]) + params["b_ff2"] + attn_out,
             params["ln2_g"], params["ln2_b"])
    return out, atten


# ----------------------------------------------------------------------------
if __name__ == "__main__":
    B, S = 2, 8
    d_model, d_k, d_v, d_ff, n_heads = 32, 8, 8, 64, 4

    root = jax.random.PRNGKey(0)
    k_param, k_x = jax.random.split(root)

    params = init_params(k_param, d_model, d_k, d_v, d_ff, n_heads)
    x = jax.random.normal(k_x, (B, S, d_model), dtype=jnp.float32)

    # Padding-style attention mask: batch 0 attends to all keys,
    # batch 1 has its last 2 key positions masked (True == masked).
    lens = jnp.array([S, S - 2])
    key_valid = jnp.arange(S)[None, :] < lens[:, None]          # (B, S)
    atten_mask = jnp.broadcast_to(~key_valid[:, None, :], (B, S, S))

    enc_out, atten = encoder_block_forward(params, x, atten_mask)
    jax.block_until_ready((enc_out, atten))

    assert enc_out.shape == (B, S, d_model) and enc_out.dtype == jnp.float32
    assert atten.shape == (B, n_heads, S, S)

    ref_out, ref_att = _reference_forward(params, x, atten_mask)
    err_out = float(jnp.max(jnp.abs(enc_out - ref_out)))
    err_att = float(jnp.max(jnp.abs(atten - ref_att)))
    assert err_out < 1e-1 and err_att < 5e-2, (err_out, err_att)

    print("KERNEL_OK")
</pallas_src>

<mosaic_0001>
module attributes {stable_mosaic.version = 11 : i64} {
  func.func @_k(%arg0: i32, %arg1: memref<8x128xf32, #tpu.memory_space<vmem>>, %arg2: memref<8x128xf32, #tpu.memory_space<vmem>>) attributes {dimension_semantics = [#tpu.dimension_semantics<arbitrary>], iteration_bounds = array<i64: 1>, scalar_prefetch = 0 : i64, scratch_operands = 0 : i64, tpu.core_type = #tpu.core_type<tc>, window_params = [{pipeline_mode = #tpu.pipeline_mode<synchronous>, transform_indices = @transform_0, window_bounds = array<i64: 8, 128>}, {pipeline_mode = #tpu.pipeline_mode<synchronous>, transform_indices = @transform_1, window_bounds = array<i64: 8, 128>}]} {
    %c0 = arith.constant 0 : index
    %c0_0 = arith.constant 0 : index
    %0 = vector.load %arg1[%c0, %c0_0] : memref<8x128xf32, #tpu.memory_space<vmem>>, vector<8x128xf32>
    %cst = arith.constant 1.000000e+00 : f32
    %1 = vector.broadcast %cst : f32 to vector<8x128xf32>
    %2 = arith.addf %0, %1 : vector<8x128xf32>
    %c0_1 = arith.constant 0 : index
    %c0_2 = arith.constant 0 : index
    %3 = vector.load %arg2[%c0_1, %c0_2] : memref<8x128xf32, #tpu.memory_space<vmem>>, vector<8x128xf32>
    tpu.vector_store %arg2[%c0_1, %c0_2], %2 {strides = array<i32>} : memref<8x128xf32, #tpu.memory_space<vmem>>, vector<8x128xf32>,
    return
  }
  func.func @transform_0(%arg0: i32) -> (i32, i32) {
    %c0_i32 = arith.constant 0 : i32
    %c0_i32_0 = arith.constant 0 : i32
    %c0_i32_1 = arith.constant 0 : i32
    return %c0_i32, %c0_i32_0 : i32, i32
  }
  func.func @transform_1(%arg0: i32) -> (i32, i32) {
    %c0_i32 = arith.constant 0 : i32
    %c0_i32_0 = arith.constant 0 : i32
    %c0_i32_1 = arith.constant 0 : i32
    return %c0_i32, %c0_i32_0 : i32, i32
  }
}

module attributes {stable_mosaic.version = 11 : i64} {
  func.func @_qkv_proj_kernel(%arg0: i32, %arg1: memref<16x32xf32, #tpu.memory_space<vmem>>, %arg2: memref<32x32xbf16, #tpu.memory_space<vmem>>, %arg3: memref<1x32xf32, #tpu.memory_space<vmem>>, %arg4: memref<32x64xbf16, #tpu.memory_space<vmem>>, %arg5: memref<1x64xf32, #tpu.memory_space<vmem>>, %arg6: memref<16x32xbf16, #tpu.memory_space<vmem>>, %arg7: memref<16x64xbf16, #tpu.memory_space<vmem>>) attributes {dimension_semantics = [#tpu.dimension_semantics<parallel>], iteration_bounds = array<i64: 1>, scalar_prefetch = 0 : i64, scratch_operands = 0 : i64, tpu.core_type = #tpu.core_type<tc>, window_params = [{transform_indices = @transform_0, window_bounds = array<i64: 16, 32>}, {pipeline_mode = #tpu.pipeline_mode<synchronous>, transform_indices = @transform_1, window_bounds = array<i64: 32, 32>}, {pipeline_mode = #tpu.pipeline_mode<synchronous>, transform_indices = @transform_2, window_bounds = array<i64: 1, 32>}, {pipeline_mode = #tpu.pipeline_mode<synchronous>, transform_indices = @transform_3, window_bounds = array<i64: 32, 64>}, {pipeline_mode = #tpu.pipeline_mode<synchronous>, transform_indices = @transform_4, window_bounds = array<i64: 1, 64>}, {transform_indices = @transform_5, window_bounds = array<i64: 16, 32>}, {transform_indices = @transform_6, window_bounds = array<i64: 16, 64>}]} {
    %c0 = arith.constant 0 : index
    %c0_0 = arith.constant 0 : index
    %0 = vector.load %arg1[%c0, %c0_0] : memref<16x32xf32, #tpu.memory_space<vmem>>, vector<16x32xf32>
    %1 = arith.truncf %0 : vector<16x32xf32> to vector<16x32xbf16>
    %c0_1 = arith.constant 0 : index
    %c0_2 = arith.constant 0 : index
    %2 = vector.load %arg2[%c0_1, %c0_2] : memref<32x32xbf16, #tpu.memory_space<vmem>>, vector<32x32xbf16>
    %cst = arith.constant dense<0.000000e+00> : vector<16x32xf32>
    %3 = tpu.matmul %1, %2, %cst {dimension_numbers = #tpu.dot_dimension_numbers<[1], [0], [0], [1], [0, 0, 1, 1], [], []>} : vector<16x32xbf16>, vector<32x32xbf16>, vector<16x32xf32> -> vector<16x32xf32>
    %c0_3 = arith.constant 0 : index
    %c0_4 = arith.constant 0 : index
    %4 = vector.load %arg3[%c0_3, %c0_4] : memref<1x32xf32, #tpu.memory_space<vmem>>, vector<1x32xf32>
    %5 = vector.broadcast %4 : vector<1x32xf32> to vector<16x32xf32>
    %6 = arith.addf %3, %5 : vector<16x32xf32>
    %c0_5 = arith.constant 0 : index
    %c0_6 = arith.constant 0 : index
    %7 = vector.load %arg4[%c0_5, %c0_6] : memref<32x64xbf16, #tpu.memory_space<vmem>>, vector<32x64xbf16>
    %cst_7 = arith.constant dense<0.000000e+00> : vector<16x64xf32>
    %8 = tpu.matmul %1, %7, %cst_7 {dimension_numbers = #tpu.dot_dimension_numbers<[1], [0], [0], [1], [0, 0, 1, 1], [], []>} : vector<16x32xbf16>, vector<32x64xbf16>, vector<16x64xf32> -> vector<16x64xf32>
    %c0_8 = arith.constant 0 : index
    %c0_9 = arith.constant 0 : index
    %9 = vector.load %arg5[%c0_8, %c0_9] : memref<1x64xf32, #tpu.memory_space<vmem>>, vector<1x64xf32>
    %10 = vector.broadcast %9 : vector<1x64xf32> to vector<16x64xf32>
    %11 = arith.addf %8, %10 : vector<16x64xf32>
    %12 = arith.truncf %6 : vector<16x32xf32> to vector<16x32xbf16>
    %c0_10 = arith.constant 0 : index
    %c0_11 = arith.constant 0 : index
    %13 = vector.load %arg6[%c0_10, %c0_11] : memref<16x32xbf16, #tpu.memory_space<vmem>>, vector<16x32xbf16>
    tpu.vector_store %arg6[%c0_10, %c0_11], %12 {strides = array<i32>} : memref<16x32xbf16, #tpu.memory_space<vmem>>, vector<16x32xbf16>,
    %14 = arith.truncf %11 : vector<16x64xf32> to vector<16x64xbf16>
    %c0_12 = arith.constant 0 : index
    %c0_13 = arith.constant 0 : index
    %15 = vector.load %arg7[%c0_12, %c0_13] : memref<16x64xbf16, #tpu.memory_space<vmem>>, vector<16x64xbf16>
    tpu.vector_store %arg7[%c0_12, %c0_13], %14 {strides = array<i32>} : memref<16x64xbf16, #tpu.memory_space<vmem>>, vector<16x64xbf16>,
    return
  }
  func.func @transform_0(%arg0: i32) -> (i32, i32) {
    %c0_i32 = arith.constant 0 : i32
    %c0_i32_0 = arith.constant 0 : i32
    return %arg0, %c0_i32 : i32, i32
  }
  func.func @transform_1(%arg0: i32) -> (i32, i32) {
    %c0_i32 = arith.constant 0 : i32
    %c0_i32_0 = arith.constant 0 : i32
    %c0_i32_1 = arith.constant 0 : i32
    return %c0_i32, %c0_i32_0 : i32, i32
  }
  func.func @transform_2(%arg0: i32) -> (i32, i32) {
    %c0_i32 = arith.constant 0 : i32
    %c0_i32_0 = arith.constant 0 : i32
    %c0_i32_1 = arith.constant 0 : i32
    return %c0_i32, %c0_i32_0 : i32, i32
  }
  func.func @transform_3(%arg0: i32) -> (i32, i32) {
    %c0_i32 = arith.constant 0 : i32
    %c0_i32_0 = arith.constant 0 : i32
    %c0_i32_1 = arith.constant 0 : i32
    return %c0_i32, %c0_i32_0 : i32, i32
  }
  func.func @transform_4(%arg0: i32) -> (i32, i32) {
    %c0_i32 = arith.constant 0 : i32
    %c0_i32_0 = arith.constant 0 : i32
    %c0_i32_1 = arith.constant 0 : i32
    return %c0_i32, %c0_i32_0 : i32, i32
  }
  func.func @transform_5(%arg0: i32) -> (i32, i32) {
    %c0_i32 = arith.constant 0 : i32
    %c0_i32_0 = arith.constant 0 : i32
    return %arg0, %c0_i32 : i32, i32
  }
  func.func @transform_6(%arg0: i32) -> (i32, i32) {
    %c0_i32 = arith.constant 0 : i32
    %c0_i32_0 = arith.constant 0 : i32
    return %arg0, %c0_i32 : i32, i32
  }
}

</mosaic_0001>

<bundles_post_ra>
// kernel: tpu_custom_call.1
= control target key start
LH: loop header
LB: loop body
LE: loop exit
PB: predicated region body
PF: predicated region fallthrough
CT: control target
= control target key end

     0   :  { %6 = vsyncpa [#allocation3], 0  ;;  %s125_s0 = inlined_call_operand.hbm [shape: f32[8,128], index: 0, kind: input, shape index: {}]   ;;  %s126_s1 = inlined_call_operand.hbm [shape: f32[8,128], index: 1, kind: output, shape index: {}]  }
   0x1   :  { %7 = vsyncpa [#allocation4], 0  ;;  %s89_s6 = smov [#allocation2]   ;;  %s41_s10 = scalar_lea.hbm %s125_s0, 128 }
   0x2   :  { %s14_s7 = sshll.u32 %s89_s6, 4  ;;  %p42_p0 = scmp.ne.s32.totalorder %s125_s0, %s41_s10  ;;  %s15_s7 = int_to_ptr.vmem [resolvable:$true] %s14_s7 }
   0x3   :  { %p45_p1 = scmp.lt.u32.totalorder %s41_s10, %s125_s0 }
   0x5   :  { %p47_p2 = pnand %p45_p1, %p42_p0 }
   0x7   :  { %50 = shalt.err (!%p47_p2)
}
   0x8   :  { %s51_s15 = scalar_lea.vmem %s15_s7, 128  ;;  %p56_p4 = scmp.lt.s32.totalorder %s15_s7, %s15_s7 }
   0x9   :  { %p52_p3 = scmp.ne.s32.totalorder %s15_s7, %s51_s15  ;;  %p57_p5 = scmp.lt.s32.totalorder %s51_s15, %s51_s15 }
   0xb   :  { %p58_p6 = por %p57_p5, %p56_p4 }
   0xd   :  { %p59_p7 = pnand %p58_p6, %p52_p3 }
   0xf   :  { %62 = shalt.err (!%p59_p7)
}
  0x10   :  { %17 = dma.hbm_to_vmem [thread:$0]  %s125_s0, 128, %s15_s7, [#allocation3]  }
  0x11   :  { %85 = dma.done.wait [#allocation3], 128  }
  0x12   :  { %86 = vsyncadd [#allocation3], 4294967168  ;;  %s90_s18 = smov [#allocation5]   ;;  %v21_v0 = vld [vmem:[#allocation2] sm:$0xff] }
  0x13   :  { %s30_s19 = sshll.u32 %s90_s18, 4  ;;  %v22_v1 = vadd.f32 1.0, %v21_v0  ;;  %s31_s19 = int_to_ptr.vmem [resolvable:$true] %s30_s19 }
  0x14   :  { %s63_s20 = scalar_lea.vmem %s31_s19, 128  ;;  %p68_p9 = scmp.lt.s32.totalorder %s31_s19, %s31_s19 }
  0x15   :  { %23 = vst [vmem:[#allocation5] sm:$0xff] %v22_v1  ;;  %p64_p8 = scmp.ne.s32.totalorder %s31_s19, %s63_s20  ;;  %p69_p10 = scmp.lt.s32.totalorder %s63_s20, %s63_s20 }
  0x17   :  { %p70_p11 = por %p69_p10, %p68_p9 }
  0x19   :  { %p71_p12 = pnand %p70_p11, %p64_p8 }
  0x1b   :  { %74 = shalt.err (!%p71_p12)
}
  0x1c   :  { %s75_s23 = scalar_lea.hbm %s126_s1, 128 }
  0x1d   :  { %p76_p13 = scmp.ne.s32.totalorder %s126_s1, %s75_s23  ;;  %p79_p0 = scmp.lt.u32.totalorder %s75_s23, %s126_s1 }
  0x1f   :  { %p81_p1 = pnand %p79_p0, %p76_p13 }
  0x21   :  { %84 = shalt.err (!%p81_p1)
}
  0x22   :  { %33 = dma.vmem_to_hbm [thread:$0]  %s31_s19, 128, %s126_s1, [#allocation4]  }
  0x23   :  { %87 = dma.done.wait [#allocation4], 128  }
  0x24   :  { %88 = vsyncadd [#allocation4], 4294967168 }
  0x25   :  { %37 = vsyncpa [#allocation3], 1 }
  0x26   :  { %38 = vsyncpa [#allocation4], 1 }

// kernel: tpu_custom_call.1
= control target key start
LH: loop header
LB: loop body
LE: loop exit
PB: predicated region body
PF: predicated region fallthrough
CT: control target
= control target key end

     0   :  { %12 = vsyncpa [#allocation3], 0  ;;  %s563_s0 = inlined_call_operand.hbm [shape: f32[16,32], index: 0, kind: input, shape index: {}]   ;;  %s564_s1 = inlined_call_operand.hbm [shape: bf16[32,32], index: 1, kind: input, shape index: {}]   ;;  %s565_s2 = inlined_call_operand.vmem [shape: f32[1,32], index: 2, kind: input, shape index: {}]   ;;  %s566_s3 = inlined_call_operand.hbm [shape: bf16[32,64], index: 3, kind: input, shape index: {}]   ;;  %s567_s4 = inlined_call_operand.vmem [shape: f32[1,64], index: 4, kind: input, shape index: {}]   ;;  %s568_s5 = inlined_call_operand.hbm [shape: bf16[16,32], index: 5, kind: output, shape index: {0}]   ;;  %s569_s6 = inlined_call_operand.hbm [shape: bf16[16,64], index: 6, kind: output, shape index: {1}]  }
   0x1   :  { %13 = vsyncpa [#allocation6], 0 }
   0x2   :  { %14 = vsyncpa [#allocation4], 0 }
   0x3   :  { %15 = vsyncpa [#allocation10], 0  ;;  %s428_s21 = smov [#allocation5]   ;;  %s310_s25 = scalar_lea.hbm %s564_s1, 256 }
   0x4   :  { %s33_s22 = sshll.u32 %s428_s21, 4  ;;  %p311_p0 = scmp.ne.s32.totalorder %s564_s1, %s310_s25  ;;  %s34_s22 = int_to_ptr.vmem [resolvable:$true] %s33_s22 }
   0x5   :  { %p314_p1 = scmp.lt.u32.totalorder %s310_s25, %s564_s1 }
   0x7   :  { %p316_p2 = pnand %p314_p1, %p311_p0 }
   0x9   :  { %319 = shalt.err (!%p316_p2)
}
   0xa   :  { %s320_s30 = scalar_lea.vmem %s34_s22, 256  ;;  %p325_p4 = scmp.lt.s32.totalorder %s34_s22, %s34_s22 }
   0xb   :  { %p321_p3 = scmp.ne.s32.totalorder %s34_s22, %s320_s30  ;;  %p326_p5 = scmp.lt.s32.totalorder %s320_s30, %s320_s30 }
   0xd   :  { %p327_p6 = por %p326_p5, %p325_p4 }
   0xf   :  { %p328_p7 = pnand %p327_p6, %p321_p3 }
  0x11   :  { %331 = shalt.err (!%p328_p7)
}
  0x12   :  { %s429_s7 = smov 64   ;;  %s430_s8 = smov 4  }
  0x13   :  { %39 = dma.hbm_to_vmem [thread:$0]  %s564_s1, 256, %s34_s22, [#allocation6], %s429_s7, %s429_s7, %s430_s8  }
  0x14   :  { %s431_s11 = smov [#allocation2]   ;;  %s332_s15 = scalar_lea.hbm %s563_s0, 256 }
  0x15   :  { %s21_s12 = sshll.u32 %s431_s11, 4  ;;  %p333_p8 = scmp.ne.s32.totalorder %s563_s0, %s332_s15  ;;  %s22_s12 = int_to_ptr.vmem [resolvable:$true] %s21_s12 }
  0x16   :  { %p336_p9 = scmp.lt.u32.totalorder %s332_s15, %s563_s0 }
  0x18   :  { %p338_p10 = pnand %p336_p9, %p333_p8 }
  0x1a   :  { %341 = shalt.err (!%p338_p10)
}
  0x1b   :  { %s342_s20 = scalar_lea.vmem %s22_s12, 256  ;;  %p347_p12 = scmp.lt.s32.totalorder %s22_s12, %s22_s12 }
  0x1c   :  { %p343_p11 = scmp.ne.s32.totalorder %s22_s12, %s342_s20  ;;  %p348_p13 = scmp.lt.s32.totalorder %s342_s20, %s342_s20 }
  0x1e   :  { %p349_p0 = por %p348_p13, %p347_p12 }
  0x20   :  { %p350_p1 = pnand %p349_p0, %p343_p11 }
  0x22   :  { %353 = shalt.err (!%p350_p1)
}
  0x23   :  { %s432_s1 = smov 128   ;;  %s433_s21 = smov 8  }
  0x24   :  { %27 = dma.hbm_to_vmem [thread:$0]  %s563_s0, 256, %s22_s12, [#allocation3], %s432_s1, %s432_s1, %s433_s21  }
  0x25   :  { %s434_s24 = smov [#allocation7]   ;;  %s354_s28 = scalar_lea.hbm %s566_s3, 256 }
  0x26   :  { %s47_s25 = sshll.u32 %s434_s24, 4  ;;  %p355_p2 = scmp.ne.s32.totalorder %s566_s3, %s354_s28  ;;  %s48_s25 = int_to_ptr.vmem [resolvable:$true] %s47_s25 }
  0x27   :  { %p358_p3 = scmp.lt.u32.totalorder %s354_s28, %s566_s3 }
  0x29   :  { %p360_p4 = pnand %p358_p3, %p355_p2 }
  0x2b   :  { %363 = shalt.err (!%p360_p4)
}
  0x2c   :  { %s364_s11 = scalar_lea.vmem %s48_s25, 256  ;;  %p369_p6 = scmp.lt.s32.totalorder %s48_s25, %s48_s25 }
  0x2d   :  { %p365_p5 = scmp.ne.s32.totalorder %s48_s25, %s364_s11  ;;  %p370_p7 = scmp.lt.s32.totalorder %s364_s11, %s364_s11 }
  0x2f   :  { %p371_p8 = por %p370_p7, %p369_p6 }
  0x31   :  { %p372_p9 = pnand %p371_p8, %p365_p5 }
  0x33   :  { %375 = shalt.err (!%p372_p9)
}
  0x34   :  { %53 = dma.hbm_to_vmem [thread:$0]  %s566_s3, 256, %s48_s25, [#allocation6], %s429_s7, %s429_s7, %s430_s8  }
  0x35   :  { %420 = dma.done.wait [#allocation3], 256  }
  0x36   :  { %421 = vsyncadd [#allocation3], 4294967040 }
  0x37   :  { %422 = dma.done.wait [#allocation6], 512  }
  0x38   :  { %423 = vsyncadd [#allocation6], 4294966784  ;;  %v435_v0 = vmov 0.0   ;;  %vm436_vm0 = vmmov 0   ;;  %v306_v1 = vld [vmem:[#allocation5] sm:$0xff]   ;;  %v307_v2 = vld [vmem:[#allocation7] sm:$0xff]  }
  0x39   :  { %279 = vmatprep.subr.bf16.mxu0 %v435_v0  ;;  %287 = vmatprep.subr.bf16.mxu1 %v435_v0  ;;  %v308_v3 = vld [vmem:[#allocation5 + $0x8] sm:$0xff]   ;;  %v309_v4 = vld [vmem:[#allocation7 + $0x8] sm:$0xff]   ;;  %v66_v5 = vld [vmem:[#allocation2] sm:$0xff]  ;;  %vm92_vm1 = vcmask 261120   ;;  %vm209_vm2 = vcmask 257024   ;;  %s437_s16 = smov [#allocation8]  }
  0x3a   :  { %283 = vmatprep.mubr.msk.bf16.mxu0 %vm436_vm0, %v435_v0  ;;  %291 = vmatprep.mubr.msk.bf16.mxu1 %vm436_vm0, %v435_v0  ;;  %v67_v6 = vld [vmem:[#allocation2 + $0x8] sm:$0xff]  ;;  %v257_v8 = vld [vmem:[%s565_s2] ss:$0 sm:$0xff]  ;;  %s228_s17 = sshll.u32 %s437_s16, 4  ;;  %vm220_vm3 = vcmask 519168   ;;  %s438_s2 = smov [#allocation9]   ;;  %s229_s17 = int_to_ptr.vmem [resolvable:$true] %s228_s17 }
  0x3b   :  { %280 = vmatpush3.bf16.msra.mxu0 %v306_v1  ;;  %288 = vmatpush3.bf16.msra.mxu1 %v307_v2  ;;  %v68_v7 = vpack.c.bf16 %v67_v6, %v66_v5  ;;  %v261_v9 = vld [vmem:[%s567_s4] ss:$0 sm:$0xff]  ;;  %s240_s18 = sshll.u32 %s438_s2, 4  ;;  %s376_s4 = scalar_lea.vmem %s229_s17, 128  ;;  %s524_s18 = int_to_ptr.vmem [resolvable:$true] %s240_s18 }
  0x3c   :  { %281 = vmatprep.subr.bf16.mxu0 %v435_v0  ;;  %289 = vmatprep.subr.bf16.mxu1 %v435_v0  ;;  %p377_p10 = scmp.ne.s32.totalorder %s229_s17, %s376_s4  ;;  %p381_p11 = scmp.lt.s32.totalorder %s229_s17, %s229_s17 }
  0x3d   :  { %p382_p12 = scmp.lt.s32.totalorder %s376_s4, %s376_s4 }
  0x3f   :  { %282 = vmatpush3.bf16.msra.mxu0 %v308_v3  ;;  %290 = vmatpush3.bf16.msra.mxu1 %v309_v4  ;;  %p383_p13 = por %p382_p12, %p381_p11 }
  0x41   :  { %p384_p0 = pnand %p383_p13, %p377_p10 }
  0x42   :  { %284 = vmatmul.mubr.msk.bf16.vlgmr.msra.gmra.mrb[0].mxu0 %vm92_vm1, %v68_v7  ;;  %292 = vmatmul.mubr.msk.bf16.vlgmr.msra.gmra.mrb[0].mxu1 %vm92_vm1, %v68_v7 }
 0x115   :  { %v130_v10 = vpop.f32.mrb[0].mxu0  ;;  %v194_v12 = vpop.f32.mrb[0].mxu1 }
 0x116   :  { %v131_v11 = vadd.f32 %v257_v8, %v130_v10  ;;  %v285_v13 = vpop.f32.mrb[1].mxu0  ;;  %v195_v14 = vadd.f32 %v261_v9, %v194_v12  ;;  %v293_v15 = vpop.f32.mrb[1].mxu1 }
 0x117   :  { %v133_v16 = vpop.f32.mrb[2].mxu0  ;;  %v197_v19 = vpop.f32.mrb[2].mxu1 }
 0x118   :  { %v269_v17 = vpack.c.bf16 %v131_v11, %v131_v11  ;;  %v134_v18 = vadd.f32 %v257_v8, %v133_v16  ;;  %v286_v20 = vpop.f32.mrb[3].mxu0  ;;  %v271_v21 = vpack.c.bf16 %v195_v14, %v195_v14  ;;  %v198_v22 = vadd.f32 %v261_v9, %v197_v19  ;;  %v294_v23 = vpop.f32.mrb[3].mxu1 }
 0x11a   :  { %v270_v24 = vpack.c.bf16 %v134_v18, %v134_v18  ;;  %210 = vst.msk [vmem:[#allocation8] sm:$0xf] %vm209_vm2, %v269_v17  ;;  %v272_v25 = vpack.c.bf16 %v198_v22, %v198_v22 }
 0x11b   :  { %221 = vst.msk [vmem:[#allocation9] sm:$0xf] %vm220_vm3, %v271_v21 }
 0x11c   :  { %211 = vst.msk [vmem:[#allocation8 + $0x4] sm:$0xf] %vm209_vm2, %v270_v24 }
 0x11d   :  { %387 = shalt.err (!%p384_p0)
}
 0x11e   :  { %s388_s1 = scalar_lea.hbm %s568_s5, 128 }
 0x11f   :  { %p389_p1 = scmp.ne.s32.totalorder %s568_s5, %s388_s1  ;;  %p392_p2 = scmp.lt.u32.totalorder %s388_s1, %s568_s5 }
 0x121   :  { %p394_p3 = pnand %p392_p2, %p389_p1 }
 0x123   :  { %397 = shalt.err (!%p394_p3)
}
 0x124   :  { %234 = dma.vmem_to_hbm [thread:$0]  %s229_s17, 128, %s568_s5, [#allocation4], %s429_s7, %s429_s7, %s430_s8   ;;  %222 = vst.msk [vmem:[#allocation9 + $0x4] sm:$0xf] %vm220_vm3, %v272_v25 }
 0x125   :  { %s398_s27 = scalar_lea.vmem %s524_s18, 128  ;;  %p403_p5 = scmp.lt.s32.totalorder %s524_s18, %s524_s18 }
 0x126   :  { %p399_p4 = scmp.ne.s32.totalorder %s524_s18, %s398_s27  ;;  %p404_p6 = scmp.lt.s32.totalorder %s398_s27, %s398_s27 }
 0x128   :  { %p405_p7 = por %p404_p6, %p403_p5 }
 0x12a   :  { %p406_p8 = pnand %p405_p7, %p399_p4 }
 0x12c   :  { %409 = shalt.err (!%p406_p8)
}
 0x12d   :  { %s410_s30 = scalar_lea.hbm %s569_s6, 128 }
 0x12e   :  { %p411_p9 = scmp.ne.s32.totalorder %s569_s6, %s410_s30  ;;  %p414_p10 = scmp.lt.u32.totalorder %s410_s30, %s569_s6 }
 0x130   :  { %p416_p11 = pnand %p414_p10, %p411_p9 }
 0x132   :  { %419 = shalt.err (!%p416_p11)
}
 0x133   :  { %246 = dma.vmem_to_hbm [thread:$0]  %s524_s18, 128, %s569_s6, [#allocation10], %s429_s7, %s429_s7, %s430_s8  }
 0x134   :  { %424 = dma.done.wait [#allocation4], 128  }
 0x135   :  { %425 = vsyncadd [#allocation4], 4294967168 }
 0x136   :  { %426 = dma.done.wait [#allocation10], 128  }
 0x137   :  { %427 = vsyncadd [#allocation10], 4294967168 }
 0x138   :  { %253 = vsyncpa [#allocation3], 1 }
 0x139   :  { %254 = vsyncpa [#allocation6], 1 }
 0x13a   :  { %255 = vsyncpa [#allocation4], 1 }
 0x13b   :  { %256 = vsyncpa [#allocation10], 1 }

</bundles_post_ra>
